<compile_context>
chip_gen: v7x
topology: tpu7x:2x2x1
jax: 0.10.0
libtpu: 0.0.40
codegen_flags: <defaults>
</compile_context>

<pallas_src>
import functools

import jax
import jax.numpy as jnp
from jax.experimental import pallas as pl
from jax.experimental.pallas import tpu as pltpu


# ---------------------------------------------------------------------------
# Kernel 1: masked statistics -> fused per-channel affine coefficients
# ---------------------------------------------------------------------------
def _rain_stats_kernel(x_ref, m_ref, p_ref, coef_ref, acc_ref, *, eps, total_hw):
    j = pl.program_id(2)                     # HW-tile index (reduction axis)

    x = x_ref[0]                             # (c_tile, hw_tile) f32
    fm = m_ref[0]                            # (1, hw_tile) foreground mask

    mx = x * fm                              # (c_tile, hw_tile)

    # Per-channel partial sums for this HW tile (exact for non-binary masks).
    s_x = jnp.sum(x, axis=1, keepdims=True)                 # (c_tile, 1)
    s_x2 = jnp.sum(x * x, axis=1, keepdims=True)
    s_mx = jnp.sum(mx, axis=1, keepdims=True)
    s_mx2 = jnp.sum(mx * x, axis=1, keepdims=True)
    s_m2x = jnp.sum(mx * fm, axis=1, keepdims=True)
    s_m2x2 = jnp.sum(mx * mx, axis=1, keepdims=True)
    s_m = jnp.sum(fm, axis=1, keepdims=True)                # (1, 1)
    s_m2 = jnp.sum(fm * fm, axis=1, keepdims=True)          # (1, 1)

    c_tile = x.shape[0]
    ones_c = jnp.ones((c_tile, 1), jnp.float32)
    sums = jnp.concatenate(
        [s_x, s_x2, s_mx, s_mx2, s_m2x, s_m2x2, s_m * ones_c, s_m2 * ones_c],
        axis=1)                                              # (c_tile, 8)

    @pl.when(j == 0)
    def _():
        acc_ref[...] = jnp.zeros_like(acc_ref)

    acc_ref[...] += sums

    @pl.when(j == pl.num_programs(2) - 1)
    def _():
        a = acc_ref[...]                                     # (c_tile, 8)
        t_x, t_x2, t_mx, t_mx2, t_m2x, t_m2x2 = (a[:, k:k + 1] for k in range(6))
        t_m = a[:, 6:7]
        t_m2 = a[:, 7:8]
        hw_f = jnp.float32(total_hw)

        # Foreground stats:  var = sum((m*x - mean*m)^2) / (num + eps)
        den_f = t_m + eps
        mean_f = t_mx / den_f
        var_f = (t_m2x2 - 2.0 * mean_f * t_m2x + mean_f * mean_f * t_m2) / den_f
        inv_std_f = jax.lax.rsqrt(var_f + eps)

        # Background stats derived from totals (bm = 1 - fm).
        s_bm = hw_f - t_m
        s_bm2 = hw_f - 2.0 * t_m + t_m2
        s_bmx = t_x - t_mx
        s_bm2x = t_x - 2.0 * t_mx + t_m2x
        s_bm2x2 = t_x2 - 2.0 * t_mx2 + t_m2x2
        den_b = s_bm + eps
        mean_b = s_bmx / den_b
        var_b = (s_bm2x2 - 2.0 * mean_b * s_bm2x + mean_b * mean_b * s_bm2) / den_b
        std_b = jnp.sqrt(var_b + eps)
        inv_std_b = jax.lax.rsqrt(var_b + eps)

        p = p_ref[...]                                       # (c_tile, 4)
        fg_g = p[:, 0:1]
        fg_b = p[:, 1:2]
        bg_g = p[:, 2:3]
        bg_b = p[:, 3:4]

        # Fused affine:  out = (A_f*x + B_f)*fm + (A_b*x + B_b)*(1-fm)
        a_b = bg_g * inv_std_b
        b_b = bg_b - a_b * mean_b
        ratio = std_b * inv_std_f
        a_f = fg_g * ratio
        b_f = fg_g * (mean_b - mean_f * ratio) + fg_b

        coef_ref[0] = jnp.concatenate([a_b, a_f - a_b, b_b, b_f - b_b], axis=1)


# ---------------------------------------------------------------------------
# Kernel 2: elementwise apply   out = x * (A_b + fm*dA) + (B_b + fm*dB)
# ---------------------------------------------------------------------------
def _rain_apply_kernel(x_ref, m_ref, coef_ref, o_ref):
    x = x_ref[0]                 # (c_tile, hw_tile)
    fm = m_ref[0]                # (1, hw_tile)
    cf = coef_ref[0]             # (c_tile, 4)
    a_b = cf[:, 0:1]
    d_a = cf[:, 1:2]
    b_b = cf[:, 2:3]
    d_b = cf[:, 3:4]

    a = a_b + d_a * fm           # (c_tile, hw_tile)
    b = b_b + d_b * fm
    o_ref[0] = x * a + b


# ---------------------------------------------------------------------------
# Helpers
# ---------------------------------------------------------------------------
def _nearest_resize_mask(mask, out_h, out_w):
    """F.interpolate(mask, (H, W)) with default mode='nearest'. mask: (N,1,h,w)."""
    n, c, h, w = mask.shape
    rows = (jnp.arange(out_h) * h // out_h).astype(jnp.int32)
    cols = (jnp.arange(out_w) * w // out_w).astype(jnp.int32)
    return mask[:, :, rows, :][:, :, :, cols]


def _pick_tile(size, align, cap):
    """Largest multiple of `align` that divides `size` and is <= cap.
    Falls back to the full size if it is not aligned or already small."""
    if size % align != 0 or size <= cap:
        return size
    best = align
    t = align
    while t <= cap:
        if size % t == 0:
            best = t
        t += align
    return best


# ---------------------------------------------------------------------------
# Public entry point
# ---------------------------------------------------------------------------
def rain_forward(x, mask, fg_gamma, fg_beta, bg_gamma, bg_beta, eps=1e-5,
                 max_hw_tile=2048, max_c_tile=256):
    """x: (N, C, H, W) float32; mask: (N, 1, h, w) float32; params: (C,)."""
    n, c, h, w = x.shape
    hw = h * w

    fmask = _nearest_resize_mask(mask, h, w).astype(jnp.float32)     # (N,1,H,W)

    x_flat = x.reshape(n, c, hw).astype(jnp.float32)
    m_flat = fmask.reshape(n, 1, hw)
    params = jnp.stack(
        [fg_gamma, fg_beta, bg_gamma, bg_beta], axis=1).astype(jnp.float32)  # (C,4)

    hw_tile = _pick_tile(hw, 128, max_hw_tile)
    c_tile = _pick_tile(c, 8, max_c_tile)
    n_hw = hw // hw_tile
    n_c = c // c_tile

    # --- pass 1: stats -> fused coefficients (N, C, 4) -----------------------
    stats_kernel = functools.partial(_rain_stats_kernel, eps=eps, total_hw=hw)
    coefs = pl.pallas_call(
        stats_kernel,
        out_shape=jax.ShapeDtypeStruct((n, c, 4), jnp.float32),
        grid_spec=pltpu.PrefetchScalarGridSpec(
            num_scalar_prefetch=0,
            grid=(n, n_c, n_hw),
            in_specs=[
                pl.BlockSpec((1, c_tile, hw_tile), lambda i, ci, j: (i, ci, j)),
                pl.BlockSpec((1, 1, hw_tile), lambda i, ci, j: (i, 0, j)),
                pl.BlockSpec((c_tile, 4), lambda i, ci, j: (ci, 0)),
            ],
            out_specs=pl.BlockSpec((1, c_tile, 4), lambda i, ci, j: (i, ci, 0)),
            scratch_shapes=[pltpu.VMEM((c_tile, 8), jnp.float32)],
        ),
        compiler_params=pltpu.CompilerParams(
            dimension_semantics=("parallel", "parallel", "arbitrary")),
    )(x_flat, m_flat, params)

    # --- pass 2: elementwise apply -------------------------------------------
    out_flat = pl.pallas_call(
        _rain_apply_kernel,
        out_shape=jax.ShapeDtypeStruct((n, c, hw), jnp.float32),
        grid_spec=pltpu.PrefetchScalarGridSpec(
            num_scalar_prefetch=0,
            grid=(n, n_c, n_hw),
            in_specs=[
                pl.BlockSpec((1, c_tile, hw_tile), lambda i, ci, j: (i, ci, j)),
                pl.BlockSpec((1, 1, hw_tile), lambda i, ci, j: (i, 0, j)),
                pl.BlockSpec((1, c_tile, 4), lambda i, ci, j: (i, ci, 0)),
            ],
            out_specs=pl.BlockSpec((1, c_tile, hw_tile), lambda i, ci, j: (i, ci, j)),
        ),
        compiler_params=pltpu.CompilerParams(
            dimension_semantics=("parallel", "parallel", "parallel")),
    )(x_flat, m_flat, coefs)

    return out_flat.reshape(n, c, h, w)


# ---------------------------------------------------------------------------
# Pure-JAX reference (mirrors the PyTorch forward exactly, two-pass variance)
# ---------------------------------------------------------------------------
def rain_reference(x, mask, fg_gamma, fg_beta, bg_gamma, bg_beta, eps=1e-5):
    n, c, h, w = x.shape
    fm = _nearest_resize_mask(mask, h, w)
    bm = 1.0 - fm

    def mean_std(region, m):
        fore = region * m
        num = jnp.sum(m, axis=(2, 3))              # (N,1)
        tmp = jnp.sum(fore, axis=(2, 3))           # (N,C)
        mean = (tmp / (num + eps))[:, :, None, None]
        var = jnp.sum((fore - mean * m) ** 2, axis=(2, 3)) / (num + eps)
        var = var[:, :, None, None]
        return mean, jnp.sqrt(var + eps)

    mean_f, std_f = mean_std(x, fm)
    mean_b, std_b = mean_std(x, bm)

    a = bg_gamma[None, :, None, None]
    b = bg_beta[None, :, None, None]
    norm_back = ((x - mean_b) / std_b * a + b) * bm

    a = fg_gamma[None, :, None, None]
    b = fg_beta[None, :, None, None]
    norm_fore = (x - mean_f) / std_f
    norm_fore = norm_fore * std_b + mean_b
    norm_fore = (norm_fore * a + b) * fm
    return norm_fore + norm_back


if __name__ == "__main__":
    key = jax.random.PRNGKey(0)
    k_x, k_m, k_p = jax.random.split(key, 3)

    N, C, H, W = 2, 4, 16, 16
    x = jax.random.normal(k_x, (N, C, H, W), dtype=jnp.float32)
    # Binary foreground mask at coarser resolution (exercises interpolate path).
    mask = (jax.random.uniform(k_m, (N, 1, 8, 8)) > 0.5).astype(jnp.float32)

    # Module __init__ uses zeros; use deterministic non-zero values so the
    # affine path is actually exercised (synthetic weights, no checkpoint).
    kp = jax.random.split(k_p, 4)
    fg_gamma = jax.random.normal(kp[0], (C,), dtype=jnp.float32)
    fg_beta = jax.random.normal(kp[1], (C,), dtype=jnp.float32)
    bg_gamma = jax.random.normal(kp[2], (C,), dtype=jnp.float32)
    bg_beta = jax.random.normal(kp[3], (C,), dtype=jnp.float32)

    # max_hw_tile=128 -> 2 HW tiles at this size, exercising the accumulator path.
    out = rain_forward(x, mask, fg_gamma, fg_beta, bg_gamma, bg_beta,
                       max_hw_tile=128)
    out = jax.block_until_ready(out)

    ref = rain_reference(x, mask, fg_gamma, fg_beta, bg_gamma, bg_beta)
    assert out.shape == (N, C, H, W)
    assert jnp.allclose(out, ref, atol=1e-4, rtol=1e-4), "mismatch vs reference"

    print("KERNEL_OK")
</pallas_src>

<mosaic_0001>
module attributes {stable_mosaic.version = 11 : i64} {
  func.func @_rain_stats_kernel(%arg0: i32, %arg1: i32, %arg2: i32, %arg3: memref<1x4x128xf32, #tpu.memory_space<vmem>>, %arg4: memref<1x1x128xf32, #tpu.memory_space<vmem>>, %arg5: memref<4x4xf32, #tpu.memory_space<vmem>>, %arg6: memref<1x4x4xf32, #tpu.memory_space<vmem>>, %arg7: memref<4x8xf32, #tpu.memory_space<vmem>>) attributes {dimension_semantics = [#tpu.dimension_semantics<parallel>, #tpu.dimension_semantics<parallel>, #tpu.dimension_semantics<arbitrary>], iteration_bounds = array<i64: 2, 1, 2>, scalar_prefetch = 0 : i64, scratch_operands = 1 : i64, tpu.core_type = #tpu.core_type<tc>, window_params = [{transform_indices = @transform_0, window_bounds = array<i64: 1, 4, 128>}, {transform_indices = @transform_1, window_bounds = array<i64: 1, 1, 128>}, {transform_indices = @transform_2, window_bounds = array<i64: 4, 4>}, {transform_indices = @transform_3, window_bounds = array<i64: 1, 4, 4>}]} {
    %c0 = arith.constant 0 : index
    %c0_0 = arith.constant 0 : index
    %c0_1 = arith.constant 0 : index
    %0 = vector.load %arg3[%c0, %c0_0, %c0_1] : memref<1x4x128xf32, #tpu.memory_space<vmem>>, vector<1x4x128xf32>
    %1 = vector.shape_cast %0 : vector<1x4x128xf32> to vector<4x128xf32>
    %c0_2 = arith.constant 0 : index
    %c0_3 = arith.constant 0 : index
    %c0_4 = arith.constant 0 : index
    %2 = vector.load %arg4[%c0_2, %c0_3, %c0_4] : memref<1x1x128xf32, #tpu.memory_space<vmem>>, vector<1x1x128xf32>
    %3 = vector.shape_cast %2 : vector<1x1x128xf32> to vector<1x128xf32>
    %4 = vector.broadcast %3 : vector<1x128xf32> to vector<4x128xf32>
    %5 = arith.mulf %1, %4 : vector<4x128xf32>
    %cst = arith.constant dense<0.000000e+00> : vector<4xf32>
    %6 = vector.multi_reduction <add>, %1, %cst [1] : vector<4x128xf32> to vector<4xf32>
    %7 = vector.shape_cast %6 : vector<4xf32> to vector<4x1xf32>
    %8 = arith.mulf %1, %1 : vector<4x128xf32>
    %cst_5 = arith.constant dense<0.000000e+00> : vector<4xf32>
    %9 = vector.multi_reduction <add>, %8, %cst_5 [1] : vector<4x128xf32> to vector<4xf32>
    %10 = vector.shape_cast %9 : vector<4xf32> to vector<4x1xf32>
    %cst_6 = arith.constant dense<0.000000e+00> : vector<4xf32>
    %11 = vector.multi_reduction <add>, %5, %cst_6 [1] : vector<4x128xf32> to vector<4xf32>
    %12 = vector.shape_cast %11 : vector<4xf32> to vector<4x1xf32>
    %13 = arith.mulf %5, %1 : vector<4x128xf32>
    %cst_7 = arith.constant dense<0.000000e+00> : vector<4xf32>
    %14 = vector.multi_reduction <add>, %13, %cst_7 [1] : vector<4x128xf32> to vector<4xf32>
    %15 = vector.shape_cast %14 : vector<4xf32> to vector<4x1xf32>
    %16 = vector.broadcast %3 : vector<1x128xf32> to vector<4x128xf32>
    %17 = arith.mulf %5, %16 : vector<4x128xf32>
    %cst_8 = arith.constant dense<0.000000e+00> : vector<4xf32>
    %18 = vector.multi_reduction <add>, %17, %cst_8 [1] : vector<4x128xf32> to vector<4xf32>
    %19 = vector.shape_cast %18 : vector<4xf32> to vector<4x1xf32>
    %20 = arith.mulf %5, %5 : vector<4x128xf32>
    %cst_9 = arith.constant dense<0.000000e+00> : vector<4xf32>
    %21 = vector.multi_reduction <add>, %20, %cst_9 [1] : vector<4x128xf32> to vector<4xf32>
    %22 = vector.shape_cast %21 : vector<4xf32> to vector<4x1xf32>
    %cst_10 = arith.constant dense<0.000000e+00> : vector<1xf32>
    %23 = vector.multi_reduction <add>, %3, %cst_10 [1] : vector<1x128xf32> to vector<1xf32>
    %24 = vector.shape_cast %23 : vector<1xf32> to vector<1x1xf32>
    %25 = arith.mulf %3, %3 : vector<1x128xf32>
    %cst_11 = arith.constant dense<0.000000e+00> : vector<1xf32>
    %26 = vector.multi_reduction <add>, %25, %cst_11 [1] : vector<1x128xf32> to vector<1xf32>
    %27 = vector.shape_cast %26 : vector<1xf32> to vector<1x1xf32>
    %cst_12 = arith.constant 1.000000e+00 : f32
    %28 = vector.broadcast %cst_12 : f32 to vector<4x1xf32>
    %29 = vector.broadcast %24 : vector<1x1xf32> to vector<4x1xf32>
    %30 = arith.mulf %29, %28 : vector<4x1xf32>
    %31 = vector.broadcast %27 : vector<1x1xf32> to vector<4x1xf32>
    %32 = arith.mulf %31, %28 : vector<4x1xf32>
    %33 = tpu.concatenate %7, %10, %12, %15, %19, %22, %30, %32 in 1 : vector<4x1xf32>, vector<4x1xf32>, vector<4x1xf32>, vector<4x1xf32>, vector<4x1xf32>, vector<4x1xf32>, vector<4x1xf32>, vector<4x1xf32> -> vector<4x8xf32>
    %c0_i32 = arith.constant 0 : i32
    %34 = arith.cmpi eq, %arg2, %c0_i32 : i32
    %35 = arith.extui %34 : i1 to i32
    %c0_i32_13 = arith.constant 0 : i32
    %36 = arith.cmpi ne, %35, %c0_i32_13 : i32
    scf.if %36 {
      %cst_19 = arith.constant 0.000000e+00 : f32
      %43 = vector.broadcast %cst_19 : f32 to vector<4x8xf32>
      %c0_20 = arith.constant 0 : index
      %c0_21 = arith.constant 0 : index
      %44 = vector.load %arg7[%c0_20, %c0_21] : memref<4x8xf32, #tpu.memory_space<vmem>>, vector<4x8xf32>
      tpu.vector_store %arg7[%c0_20, %c0_21], %43 {strides = array<i32>} : memref<4x8xf32, #tpu.memory_space<vmem>>, vector<4x8xf32>,
    } else {
    }
    %c0_14 = arith.constant 0 : index
    %c0_15 = arith.constant 0 : index
    %37 = vector.load %arg7[%c0_14, %c0_15] : memref<4x8xf32, #tpu.memory_space<vmem>>, vector<4x8xf32>
    %38 = arith.addf %37, %33 : vector<4x8xf32>
    %c0_16 = arith.constant 0 : index
    %c0_17 = arith.constant 0 : index
    %39 = vector.load %arg7[%c0_16, %c0_17] : memref<4x8xf32, #tpu.memory_space<vmem>>, vector<4x8xf32>
    tpu.vector_store %arg7[%c0_16, %c0_17], %38 {strides = array<i32>} : memref<4x8xf32, #tpu.memory_space<vmem>>, vector<4x8xf32>,
    %c1_i32 = arith.constant 1 : i32
    %40 = arith.cmpi eq, %arg2, %c1_i32 : i32
    %41 = arith.extui %40 : i1 to i32
    %c0_i32_18 = arith.constant 0 : i32
    %42 = arith.cmpi ne, %41, %c0_i32_18 : i32
    scf.if %42 {
      %c0_19 = arith.constant 0 : index
      %c0_20 = arith.constant 0 : index
      %43 = vector.load %arg7[%c0_19, %c0_20] : memref<4x8xf32, #tpu.memory_space<vmem>>, vector<4x8xf32>
      %44 = vector.extract_strided_slice %43 {offsets = [0, 0], sizes = [4, 1], strides = [1, 1]} : vector<4x8xf32> to vector<4x1xf32>
      %45 = vector.extract_strided_slice %43 {offsets = [0, 1], sizes = [4, 1], strides = [1, 1]} : vector<4x8xf32> to vector<4x1xf32>
      %46 = vector.extract_strided_slice %43 {offsets = [0, 2], sizes = [4, 1], strides = [1, 1]} : vector<4x8xf32> to vector<4x1xf32>
      %47 = vector.extract_strided_slice %43 {offsets = [0, 3], sizes = [4, 1], strides = [1, 1]} : vector<4x8xf32> to vector<4x1xf32>
      %48 = vector.extract_strided_slice %43 {offsets = [0, 4], sizes = [4, 1], strides = [1, 1]} : vector<4x8xf32> to vector<4x1xf32>
      %49 = vector.extract_strided_slice %43 {offsets = [0, 5], sizes = [4, 1], strides = [1, 1]} : vector<4x8xf32> to vector<4x1xf32>
      %50 = vector.extract_strided_slice %43 {offsets = [0, 6], sizes = [4, 1], strides = [1, 1]} : vector<4x8xf32> to vector<4x1xf32>
      %51 = vector.extract_strided_slice %43 {offsets = [0, 7], sizes = [4, 1], strides = [1, 1]} : vector<4x8xf32> to vector<4x1xf32>
      %cst_21 = arith.constant 9.99999974E-6 : f32
      %52 = vector.broadcast %cst_21 : f32 to vector<4x1xf32>
      %53 = arith.addf %50, %52 : vector<4x1xf32>
      %54 = arith.divf %46, %53 : vector<4x1xf32>
      %cst_22 = arith.constant 2.000000e+00 : f32
      %55 = vector.broadcast %cst_22 : f32 to vector<4x1xf32>
      %56 = arith.mulf %55, %54 : vector<4x1xf32>
      %57 = arith.mulf %56, %48 : vector<4x1xf32>
      %58 = arith.subf %49, %57 : vector<4x1xf32>
      %59 = arith.mulf %54, %54 : vector<4x1xf32>
      %60 = arith.mulf %59, %51 : vector<4x1xf32>
      %61 = arith.addf %58, %60 : vector<4x1xf32>
      %62 = arith.divf %61, %53 : vector<4x1xf32>
      %cst_23 = arith.constant 9.99999974E-6 : f32
      %63 = vector.broadcast %cst_23 : f32 to vector<4x1xf32>
      %64 = arith.addf %62, %63 : vector<4x1xf32>
      %65 = math.rsqrt %64 : vector<4x1xf32>
      %cst_24 = arith.constant 2.560000e+02 : f32
      %66 = vector.broadcast %cst_24 : f32 to vector<4x1xf32>
      %67 = arith.subf %66, %50 : vector<4x1xf32>
      %cst_25 = arith.constant 2.000000e+00 : f32
      %68 = vector.broadcast %cst_25 : f32 to vector<4x1xf32>
      %69 = arith.mulf %68, %50 : vector<4x1xf32>
      %cst_26 = arith.constant 2.560000e+02 : f32
      %70 = vector.broadcast %cst_26 : f32 to vector<4x1xf32>
      %71 = arith.subf %70, %69 : vector<4x1xf32>
      %72 = arith.addf %71, %51 : vector<4x1xf32>
      %73 = arith.subf %44, %46 : vector<4x1xf32>
      %cst_27 = arith.constant 2.000000e+00 : f32
      %74 = vector.broadcast %cst_27 : f32 to vector<4x1xf32>
      %75 = arith.mulf %74, %46 : vector<4x1xf32>
      %76 = arith.subf %44, %75 : vector<4x1xf32>
      %77 = arith.addf %76, %48 : vector<4x1xf32>
      %cst_28 = arith.constant 2.000000e+00 : f32
      %78 = vector.broadcast %cst_28 : f32 to vector<4x1xf32>
      %79 = arith.mulf %78, %47 : vector<4x1xf32>
      %80 = arith.subf %45, %79 : vector<4x1xf32>
      %81 = arith.addf %80, %49 : vector<4x1xf32>
      %cst_29 = arith.constant 9.99999974E-6 : f32
      %82 = vector.broadcast %cst_29 : f32 to vector<4x1xf32>
      %83 = arith.addf %67, %82 : vector<4x1xf32>
      %84 = arith.divf %73, %83 : vector<4x1xf32>
      %cst_30 = arith.constant 2.000000e+00 : f32
      %85 = vector.broadcast %cst_30 : f32 to vector<4x1xf32>
      %86 = arith.mulf %85, %84 : vector<4x1xf32>
      %87 = arith.mulf %86, %77 : vector<4x1xf32>
      %88 = arith.subf %81, %87 : vector<4x1xf32>
      %89 = arith.mulf %84, %84 : vector<4x1xf32>
      %90 = arith.mulf %89, %72 : vector<4x1xf32>
      %91 = arith.addf %88, %90 : vector<4x1xf32>
      %92 = arith.divf %91, %83 : vector<4x1xf32>
      %cst_31 = arith.constant 9.99999974E-6 : f32
      %93 = vector.broadcast %cst_31 : f32 to vector<4x1xf32>
      %94 = arith.addf %92, %93 : vector<4x1xf32>
      %95 = math.sqrt %94 : vector<4x1xf32>
      %cst_32 = arith.constant 9.99999974E-6 : f32
      %96 = vector.broadcast %cst_32 : f32 to vector<4x1xf32>
      %97 = arith.addf %92, %96 : vector<4x1xf32>
      %98 = math.rsqrt %97 : vector<4x1xf32>
      %c0_33 = arith.constant 0 : index
      %c0_34 = arith.constant 0 : index
      %99 = vector.load %arg5[%c0_33, %c0_34] : memref<4x4xf32, #tpu.memory_space<vmem>>, vector<4x4xf32>
      %100 = vector.extract_strided_slice %99 {offsets = [0, 0], sizes = [4, 1], strides = [1, 1]} : vector<4x4xf32> to vector<4x1xf32>
      %101 = vector.extract_strided_slice %99 {offsets = [0, 1], sizes = [4, 1], strides = [1, 1]} : vector<4x4xf32> to vector<4x1xf32>
      %102 = vector.extract_strided_slice %99 {offsets = [0, 2], sizes = [4, 1], strides = [1, 1]} : vector<4x4xf32> to vector<4x1xf32>
      %103 = vector.extract_strided_slice %99 {offsets = [0, 3], sizes = [4, 1], strides = [1, 1]} : vector<4x4xf32> to vector<4x1xf32>
      %104 = arith.mulf %102, %98 : vector<4x1xf32>
      %105 = arith.mulf %104, %84 : vector<4x1xf32>
      %106 = arith.subf %103, %105 : vector<4x1xf32>
      %107 = arith.mulf %95, %65 : vector<4x1xf32>
      %108 = arith.mulf %100, %107 : vector<4x1xf32>
      %109 = arith.mulf %54, %107 : vector<4x1xf32>
      %110 = arith.subf %84, %109 : vector<4x1xf32>
      %111 = arith.mulf %100, %110 : vector<4x1xf32>
      %112 = arith.addf %111, %101 : vector<4x1xf32>
      %113 = arith.subf %108, %104 : vector<4x1xf32>
      %114 = arith.subf %112, %106 : vector<4x1xf32>
      %115 = tpu.concatenate %104, %113, %106, %114 in 1 : vector<4x1xf32>, vector<4x1xf32>, vector<4x1xf32>, vector<4x1xf32> -> vector<4x4xf32>
      %c0_35 = arith.constant 0 : index
      %c0_36 = arith.constant 0 : index
      %c0_37 = arith.constant 0 : index
      %116 = vector.load %arg6[%c0_35, %c0_36, %c0_37] : memref<1x4x4xf32, #tpu.memory_space<vmem>>, vector<1x4x4xf32>
      %117 = vector.shape_cast %116 : vector<1x4x4xf32> to vector<4x4xf32>
      %118 = vector.shape_cast %115 : vector<4x4xf32> to vector<1x4x4xf32>
      tpu.vector_store %arg6[%c0_35, %c0_36, %c0_37], %118 {strides = array<i32>} : memref<1x4x4xf32, #tpu.memory_space<vmem>>, vector<1x4x4xf32>,
    } else {
    }
    return
  }
  func.func @transform_0(%arg0: i32, %arg1: i32, %arg2: i32) -> (i32, i32, i32) {
    %c0_i32 = arith.constant 0 : i32
    return %arg0, %arg1, %arg2 : i32, i32, i32
  }
  func.func @transform_1(%arg0: i32, %arg1: i32, %arg2: i32) -> (i32, i32, i32) {
    %c0_i32 = arith.constant 0 : i32
    %c0_i32_0 = arith.constant 0 : i32
    return %arg0, %c0_i32, %arg2 : i32, i32, i32
  }
  func.func @transform_2(%arg0: i32, %arg1: i32, %arg2: i32) -> (i32, i32) {
    %c0_i32 = arith.constant 0 : i32
    %c0_i32_0 = arith.constant 0 : i32
    return %arg1, %c0_i32 : i32, i32
  }
  func.func @transform_3(%arg0: i32, %arg1: i32, %arg2: i32) -> (i32, i32, i32) {
    %c0_i32 = arith.constant 0 : i32
    %c0_i32_0 = arith.constant 0 : i32
    return %arg0, %arg1, %c0_i32 : i32, i32, i32
  }
}

</mosaic_0001>

<bundles_post_ra>
// kernel: tpu_custom_call.1
= control target key start
LH: loop header
LB: loop body
LE: loop exit
PB: predicated region body
PF: predicated region fallthrough
CT: control target
= control target key end

     0   :  { %s1335_s0 = inlined_call_operand.hbm [shape: f32[2,4,256], index: 0, kind: input, shape index: {}]   ;;  %s1336_s1 = inlined_call_operand.hbm [shape: f32[2,1,256], index: 1, kind: input, shape index: {}]   ;;  %s1337_s2 = inlined_call_operand.vmem [shape: f32[4,4], index: 2, kind: input, shape index: {}]   ;;  %s1338_s3 = inlined_call_operand.hbm [shape: f32[2,4,4], index: 3, kind: output, shape index: {}]  }
   0x1   :  { %1344 = sst [smem:[#allocation15_spill]] %s1335_s0 }
   0x2   :  { %8 = vsyncpa [#allocation4], 0 }
   0x3   :  { %10 = vsyncpa [#allocation4 + $0x1], 0 }
   0x4   :  { %11 = vsyncpa [#allocation7], 0 }
   0x5   :  { %13 = vsyncpa [#allocation7 + $0x1], 0 }
   0x6   :  { %14 = vsyncpa [#allocation5], 0 }
   0x7   :  { %16 = vsyncpa [#allocation5 + $0x1], 0  ;;  %s1015_s12 = smov 0   ;;  %s1017_s13 = smov 0  }
   0x8   :  { %s1019_s14 = smov 0   ;;  %s1021_s15 = smov 0  }
   0x9   :  { %s1023_s16 = smov 0   ;;  %s1025_s17 = smov 0  }
   0xa   :  { %s1027_s18 = smov 0   ;;  %s1029_s19 = smov 0  }
   0xb   :  { %s1031_s20 = smov 0   ;;  %s1033_s21 = smov 0  }
   0xc   :  { %s1035_s22 = smov 0  }
   0xd LB: > { %1345 = sst [smem:[#allocation12_spill]] %s976_s21  ;;  %s646_s23 = sadd.s32 4294967295, %s980_s22   ;;  %s980_s22 = sphi %s1035_s22, %s22_s22   ;;  %s976_s21 = sphi %s1033_s21, %s1363_s21   ;;  %s972_s20 = sphi %s1031_s20, %s1371_s20   ;;  %s968_s19 = sphi %s1029_s19, %s1361_s19   ;;  %s964_s18 = sphi %s1027_s18, %s1370_s18   ;;  %s960_s17 = sphi %s1025_s17, %s1369_s17   ;;  %s956_s16 = sphi %s1023_s16, %s1368_s16   ;;  %s952_s15 = sphi %s1021_s15, %s1367_s15   ;;  %s948_s14 = sphi %s1019_s14, %s1366_s14   ;;  %s944_s13 = sphi %s1017_s13, %s1365_s13   ;;  %s940_s12 = sphi %s1015_s12, %s1364_s12  }
   0xe   : > { %s647_s24 = sadd.s32 4294967294, %s980_s22   ;;  %s34_s25 = sadd.s32 1, %s972_s20 }
   0xf   : > { %s41_s26 = sadd.s32 1, %s976_s21  ;;  %p35_p0 = scmp.ge.s32.totalorder %s34_s25, 2 }
  0x10   : > { %s52_s27 = sadd.s32 1, %s960_s17  ;;  %p59_p1 = scmp.ne.s32.totalorder %s960_s17, %s956_s16 }
  0x11   : > { %p60_p2 = scmp.eq.s32.totalorder %s980_s22, 0  ;;  %s1373_s25 = smov (%p35_p0, %s34_s25), 0 }
  0x12   : > { %1346 = sst [smem:[#allocation13_spill]] %s1373_s25  ;;  %s1375_s26 = smov (!%p35_p0, %s41_s26), %s976_s21 }
  0x13   : > { %s48_s28 = ssub.s32 %s972_s20, %s1373_s25  ;;  %p1081_p3 = por %p60_p2, %p59_p1 }
  0x14   : > { %p43_p4 = scmp.ge.s32.totalorder %s1375_s26, 2  ;;  %p65_p5 = scmp.ne.s32.totalorder %s956_s16, %s952_s15 }
  0x15   : > { %p66_p6 = scmp.eq.s32.totalorder %s646_s23, 0  ;;  %s134_s30 = sadd.s32 1, %s948_s14 }
  0x16   : > { %s1377_s26 = smov (%p43_p4, %s1375_s26), 0  ;;  %p144_p8 = scmp.ne.s32.totalorder %s948_s14, %s944_s13 }
  0x17   : > { %1348 = sst [smem:[#allocation14_spill]] %s1377_s26  ;;  %p1089_p7 = por %p66_p6, %p65_p5 }
  0x18   : > { %s45_s5 = ssub.s32 %s976_s21, %s1377_s26  ;;  %p145_p9 = scmp.eq.s32.totalorder %s646_s23, 3 }
  0x19   : > { %s1349_s4 = scalar_select %p1089_p7, 1, 0 }
  0x1a   : > { %s49_s6 = sor.u32 %s48_s28, %s45_s5  ;;  %p132_p10 = scmp.eq.s32.totalorder %s45_s5, 0 }
  0x1b   : > { %p50_p11 = scmp.eq.s32.totalorder %s49_s6, 0  ;;  %p1097_p12 = por %p145_p9, %p144_p8 }
  0x1c   : > { %s1102_s8 = scalar_select %p132_p10, %s948_s14, %s134_s30  }
  0x1d   : > { %s1350_s7 = scalar_select %p1097_p12, 1, 0 }
  0x1e   : > { %s1105_s9 = scalar_select %p50_p11, %s960_s17, %s52_s27  }
  0x1f   : > { %p150_p13 = scmp.ne.s32.totalorder %s944_s13, %s940_s12  ;;  %p151_p0 = scmp.eq.s32.totalorder %s647_s24, 3 }
  0x20   : > { %p682_p1 = scmp.lt.s32.totalorder %s980_s22, 4  ;;  %s1115_s11 = sand.u32 1, %s960_s17  }
  0x21   : > { %p1110_p2 = por %p151_p0, %p150_p13  ;;  %s651_s15 = sshll.u32 %s1115_s11, 2 }
  0x22   : > { %s652_s23 = sshll.u32 %s976_s21, 1  ;;  %s182_s30 = scalar_lea.vmem [#allocation3], %s651_s15 }
  0x23   : > { %s1351_s10 = scalar_select %p1110_p2, 1, 0 }
  0x24   : > { %s1120_s28 = sadd.s32 %s972_s20, %s652_s23  ;;  %s193_s27 = sshll.u32 %s182_s30, 4  ;;  %s1123_s27 = int_to_ptr.vmem [resolvable:$true] %s193_s27 }
  0x25   : > { %s653_s5 = sshll.u32 %s1120_s28, 6  ;;  %s1352_s0 = sld [smem:[#allocation15_spill]] }
  0x26   : > { %p1132_p4 = pnand %p682_p1, %p1081_p3  ;;  %s179_s15 = scalar_lea.sflag [#allocation4], %s1115_s11 }
  0x28   : > { %p796_p9 = pneg %p1132_p4 }
  0x2b   : > { %s1128_s26 = scalar_lea.hbm %s1352_s0, %s653_s5  ;;  %s799_s5 = scalar_lea.hbm %s1352_s0, 256 }
  0x2c   : > { %s794_s23 = scalar_lea.hbm %s1128_s26, 64  ;;  %p800_p3 = scmp.lt.u32.totalorder %s1128_s26, %s1352_s0 }
  0x2d   : > { %p795_p8 = scmp.ne.s32.totalorder %s1128_s26, %s794_s23  ;;  %p801_p13 = scmp.lt.u32.totalorder %s799_s5, %s794_s23 }
  0x2e   : > { %p803_p1 = scmp.lt.u32.totalorder %s794_s23, %s1128_s26 }
  0x2f   : > { %p797_p10 = pnand %p796_p9, %p795_p8  ;;  %p802_p0 = por %p801_p13, %p800_p3 }
  0x31   : > { %p798_p11 = pneg %p797_p10  ;;  %p804_p5 = por %p803_p1, %p802_p0 }
  0x33   : > { %p805_p6 = pnand %p804_p5, %p798_p11 }
  0x35   : > { %808 = shalt.err (!%p805_p6)
}
  0x36   : > { %s809_s21 = scalar_lea.vmem %s1123_s27, 64  ;;  %s982_s29 = smov [#allocation3]  }
  0x37   : > { %p810_p8 = scmp.ne.s32.totalorder %s1123_s27, %s809_s21  ;;  %s814_s30 = sshll.u32 %s982_s29, 4  ;;  %s815_s30 = int_to_ptr.vmem [resolvable:$false] %s814_s30 }
  0x38   : > { %s816_s24 = scalar_lea.vmem %s815_s30, 128  ;;  %p817_p12 = scmp.lt.s32.totalorder %s1123_s27, %s815_s30 }
  0x39   : > { %p812_p10 = pnand %p810_p8, %p796_p9  ;;  %p818_p3 = scmp.lt.s32.totalorder %s816_s24, %s809_s21 }
  0x3b   : > { %p813_p2 = pneg %p812_p10  ;;  %p819_p13 = por %p818_p3, %p817_p12 }
  0x3d   : > { %p820_p0 = pnand %p819_p13, %p813_p2 }
  0x3f   : > { %823 = shalt.err (!%p820_p0)
}
  0x40   : > { %674 = dma.hbm_to_vmem [thread:$0]  (!%p1132_p4), %s1128_s26, 64, %s1123_s27, %s179_s15  }
  0x41   : > { %p1354_p5 = scmp.lt.s32.totalorder %s980_s22, 5  ;;  %p1355_p6 = scmp.ge.s32.totalorder %s980_s22, 1 }
  0x42   : > { %s655_s21 = sshll.u32 %s1120_s28, 4  ;;  %s203_s5 = scalar_lea.vmem [#allocation6], %s1115_s11 }
  0x43   : > { %p1168_p11 = pnand %p1355_p6, %p1354_p5  ;;  %s212_s6 = sshll.u32 %s203_s5, 4  ;;  %s213_s6 = int_to_ptr.vmem [resolvable:$true] %s212_s6 }
  0x44   : > { %s1177_s24 = scalar_lea.hbm %s1336_s1, %s655_s21  ;;  %s201_s26 = scalar_lea.sflag [#allocation7], %s1115_s11 }
  0x45   : > { %s1356_s23 = scalar_select %p1168_p11, 1, 0 }
  0x46   : > { %s824_s27 = scalar_lea.hbm %s1177_s24, 16  ;;  %s829_s5 = scalar_lea.hbm %s1336_s1, 64 }
  0x47   : > { %p825_p12 = scmp.ne.s32.totalorder %s1177_s24, %s824_s27  ;;  %p830_p8 = scmp.lt.u32.totalorder %s1177_s24, %s1336_s1 }
  0x48   : > { %p831_p10 = scmp.lt.u32.totalorder %s829_s5, %s824_s27  ;;  %p833_p13 = scmp.lt.u32.totalorder %s824_s27, %s1177_s24 }
  0x49   : > { %p827_p2 = pnand %p825_p12, %p796_p9 }
  0x4a   : > { %p832_p3 = por %p831_p10, %p830_p8 }
  0x4b   : > { %p828_p1 = pneg %p827_p2 }
  0x4c   : > { %p834_p0 = por %p833_p13, %p832_p3 }
  0x4e   : > { %p835_p5 = pnand %p834_p0, %p828_p1 }
  0x50   : > { %838 = shalt.err (!%p835_p5)
}
  0x51   : > { %s839_s11 = scalar_lea.vmem %s213_s6, 16  ;;  %s983_s21 = smov [#allocation6]  }
  0x52   : > { %p840_p6 = scmp.ne.s32.totalorder %s213_s6, %s839_s11  ;;  %s844_s30 = sshll.u32 %s983_s21, 4  ;;  %s845_s30 = int_to_ptr.vmem [resolvable:$false] %s844_s30 }
  0x53   : > { %s846_s28 = scalar_lea.vmem %s845_s30, 32  ;;  %p847_p7 = scmp.lt.s32.totalorder %s213_s6, %s845_s30 }
  0x54   : > { %p842_p12 = pnand %p840_p6, %p796_p9  ;;  %p848_p11 = scmp.lt.s32.totalorder %s846_s28, %s839_s11 }
  0x56   : > { %p843_p2 = pneg %p842_p12  ;;  %p849_p8 = por %p848_p11, %p847_p7 }
  0x58   : > { %p850_p10 = pnand %p849_p8, %p843_p2 }
  0x5a   : > { %853 = shalt.err (!%p850_p10)
}
  0x5b   : > { %677 = dma.hbm_to_vmem [thread:$0]  (!%p1132_p4), %s1177_s24, 16, %s213_s6, %s201_s26  }
  0x5c   : > { %p1357_p1 = scmp.ne.s32.totalorder %s1356_s23, 0 }
  0x5d   : > { %s223_s0 = sand.u32 (!%p1357_p1), 1, %s956_s16   ;;  %p1358_p9 = scmp.ne.s32.totalorder (!%p1357_p1), %s1349_s4, 0 }
  0x5e   : > { %221 = sbr.rel (%p1357_p1) target bundleno = 1140 (0x474), region = 32  ;;  %s657_s27 = sshll.u32 (!%p1357_p1), %s223_s0, 2 }
  0x5f   : > { %s224_s15 = scalar_lea.sflag (!%p1357_p1), [#allocation4], %s223_s0  ;;  %s227_s5 = scalar_lea.vmem (!%p1357_p1), [#allocation3], %s657_s27 }
  0x65   : > { %927 = dma.done.wait (%p1358_p9), %s224_s15, 64  }
  0x66   : > { %929 = vsyncadd (%p1358_p9), %s224_s15, 4294967232  ;;  %s233_s29 = scalar_lea.sflag [#allocation7], %s223_s0  ;;  %s235_s11 = scalar_lea.vmem [#allocation6], %s223_s0 }
  0x67   : > { %931 = dma.done.wait (%p1358_p9), %s233_s29, 16  }
  0x68   : > { %933 = vsyncadd (%p1358_p9), %s233_s29, 4294967280  ;;  %v273_v0 = vlaneseq  ;;  %vm302_vm0 = vcmask 1040384   ;;  %vm279_vm1 = vcmask 1043456   ;;  %v271_v3 = vld [vmem:[%s235_s11] sm:$0x1]  ;;  %s263_s25 = sand.u32 1, %s944_s13  }
  0x69   : > { %v270_v4 = vld [vmem:[%s227_s5] sm:$0xf]  ;;  %v303_v5 = vsel %vm302_vm0, %v271_v3, 0.0  ;;  %v306_v17 = vmul.f32 %v271_v3, %v271_v3  ;;  %s1221_s4 = sshll.u32 %s263_s25, 2  ;;  %vm318_vm2 = vcmask 7168   ;;  %vm320_vm3 = vcmask 15360  }
  0x6a   : > { %v274_v1 = vshrl.u32 %v273_v0, 7  ;;  %v280_v7 = vsel %vm279_vm1, %v270_v4, 0.0  ;;  %v283_v8 = vmul.f32 %v270_v4, %v270_v4  ;;  %304 = vadd.xlane.f32.xlu1 %v303_v5  ;;  %vm322_vm4 = vcmask 23552   ;;  %s265_s23 = scalar_lea.vmem [#allocation8], %s1221_s4  ;;  %p659_p7 = scmp.ne.s32.totalorder %s964_s18, 0 }
  0x6b   : > { %281 = vadd.xlane.f32.xlu0 %v280_v7  ;;  %v307_v19 = vsel %vm302_vm0, %v306_v17, 0.0  ;;  %vm324_vm5 = vcmask 31744   ;;  %vm326_vm6 = vcmask 39936   ;;  %vm328_vm7 = vcmask 48128  }
  0x6c   : > { %v275_v2 = vsub.s32 0, %v274_v1  ;;  %v284_v10 = vsel %vm279_vm1, %v283_v8, 0.0  ;;  %vm330_vm8 = vcmask 56320   ;;  %vm336_vm9 = vcmask (!%p659_p7), 60416  }
  0x6d   : > { %v984_v37 = vmov (!%p659_p7), 0.0  }
  0x6e   : > { %v276_v6 = vrot.slane %v271_v3, %v275_v2  ;;  %337 = vst.msk [vmem:[#allocation2] sm:$0xf] (!%p659_p7), %vm336_vm9, %v984_v37 }
  0x6f   : > { %285 = vadd.xlane.f32.xlu0 %v284_v10 }
  0x70   : > { %v278_v9 = vmul.f32 %v276_v6, %v270_v4 }
  0x72   : > { %v287_v11 = vsel %vm279_vm1, %v278_v9, 0.0  ;;  %v294_v12 = vmul.f32 %v278_v9, %v276_v6  ;;  %v290_v13 = vmul.f32 %v278_v9, %v270_v4  ;;  %v298_v16 = vmul.f32 %v278_v9, %v278_v9 }
  0x73   : > { %288 = vadd.xlane.f32.xlu1 %v287_v11 }
  0x74   : > { %v295_v14 = vsel %vm279_vm1, %v294_v12, 0.0  ;;  %v291_v15 = vsel %vm279_vm1, %v290_v13, 0.0  ;;  %v299_v18 = vsel %vm279_vm1, %v298_v16, 0.0 }
  0x75   : > { %296 = vadd.xlane.f32.xlu0 %v295_v14 }
  0x77   : > { %292 = vadd.xlane.f32.xlu1 %v291_v15 }
  0x79   : > { %300 = vadd.xlane.f32.xlu0 %v299_v18 }
  0x7b   : > { %308 = vadd.xlane.f32.xlu1 %v307_v19 }
  0xf7   : > { %v305_v20 = vpop.xlane.xlu1 %304 }
  0xf8   : > { %v282_v21 = vpop.xlane.xlu0 %281  ;;  %v313_v29 = vrot.slane %v305_v20, %v275_v2 }
  0xfc   : > { %v286_v22 = vpop.xlane.xlu0 %285 }
  0xfd   : > { %v319_v24 = vsel %vm318_vm2, %v282_v21, %v286_v22 }
 0x100   : > { %v289_v23 = vpop.xlane.xlu1 %288 }
 0x101   : > { %v321_v25 = vsel %vm320_vm3, %v319_v24, %v289_v23 }
 0x102   : > { %v297_v26 = vpop.xlane.xlu0 %296 }
 0x104   : > { %v293_v27 = vpop.xlane.xlu1 %292 }
 0x105   : > { %v323_v28 = vsel %vm322_vm4, %v321_v25, %v293_v27  ;;  %335 = sbr.rel (%p659_p7) target bundleno = 268 (0x10c), region = 44 }
 0x106   : > { %v301_v30 = vpop.xlane.xlu0 %300  ;;  %v325_v31 = vsel %vm324_vm5, %v323_v28, %v297_v26 }
 0x107   : > { %v327_v33 = vsel %vm326_vm6, %v325_v31, %v301_v30 }
 0x108   : > { %v309_v32 = vpop.xlane.xlu1 %308  ;;  %v329_v35 = vsel %vm328_vm7, %v327_v33, %v313_v29 }
 0x109   : > { %v317_v34 = vrot.slane %v309_v32, %v275_v2 }
 0x10b   : > { %v331_v36 = vsel %vm330_vm8, %v329_v35, %v317_v34 }
 0x10c PF: > { %v338_v38 = vld [vmem:[#allocation2] sm:$0xf]  ;;  %vm340_vm10 = vcmask 60416   ;;  %p660_p4 = scmp.ne.s32.totalorder %s964_s18, 1 }
 0x10d   : > { %v339_v39 = vadd.f32 %v338_v38, %v331_v36  ;;  %s985_s6 = smov (!%p660_p4), 127   ;;  %s986_s24 = smov (!%p660_p4), 124   ;;  %v438_v30 = vld [vmem:[%s1337_s2] sm:$0xf] (!%p660_p4)  ;;  %vm503_vm13 = vcmask (!%p660_p4), 27648  }
 0x10e   : > { %345 = sbr.rel (%p660_p4) target bundleno = 1115 (0x45b), region = 48  ;;  %s987_s26 = smov (!%p660_p4), 122  }
 0x10f   : > { %341 = vst.msk [vmem:[#allocation2] sm:$0xf] %vm340_vm10, %v339_v39  ;;  %s988_s21 = smov (!%p660_p4), 126   ;;  %s989_s18 = smov (!%p660_p4), 123  }
 0x110   : > { %s990_s30 = smov (!%p660_p4), 3   ;;  %s991_s28 = smov (!%p660_p4), 1  }
 0x111   : > { %s992_s0 = smov (!%p660_p4), 2   ;;  %s993_s5 = smov (!%p660_p4), 125  }
 0x116   : > { %v346_v40 = vld [vmem:[#allocation2] sm:$0xf] }
 0x117   : > { %385 = vrot.lane.b32.xlu0 %v346_v40, %s985_s6  ;;  %v347_v41 = vadd.f32 1e-05, %v346_v40  ;;  %v382_v42 = vsub.f32 256.0, %v346_v40  ;;  %v383_v44 = vmul.f32 2.0, %v346_v40 }
 0x119   : > { %v399_v43 = vadd.f32 1e-05, %v382_v42  ;;  %v384_v45 = vsub.f32 256.0, %v383_v44 }
 0x11b   : > { %349 = vrot.lane.b32.xlu0 %v347_v41, %s986_s24  ;;  %401 = vrot.lane.b32.xlu1 %v399_v43, %s987_s26 }
 0x11f   : > { %356 = vrot.lane.b32.xlu1 %v346_v40, %s988_s21  ;;  %391 = vrot.lane.b32.xlu0 %v383_v44, %s988_s21 }
 0x123   : > { %366 = vrot.lane.b32.xlu1 %v346_v40, %s989_s18  ;;  %395 = vrot.lane.b32.xlu0 %v346_v40, %s986_s24 }
 0x127   : > { %375 = vrot.lane.b32.xlu0 %v347_v41, %s985_s6 }
 0x189   : > { %v386_v46 = vpop.permute.xlu0 %385 }
 0x18a   : > { %v388_v47 = vadd.f32 %v386_v46, %v384_v45 }
 0x18c   : > { %415 = vrot.lane.b32.xlu1 %v388_v47, %s987_s26 }
 0x18d   : > { %v350_v48 = vpop.permute.xlu0 %349  ;;  %v402_v49 = vpop.permute.xlu1 %401 }
 0x18e   : > { %782 = vrcp.f32 %v350_v48 }
 0x18f   : > { %784 = vrcp.f32 %v402_v49 }
 0x190   : > { %424 = vrot.lane.b32.xlu1 %v399_v43, %s989_s18 }
 0x191   : > { %v392_v50 = vpop.permute.xlu0 %391  ;;  %v357_v51 = vpop.permute.xlu1 %356 }
 0x192   : > { %v389_v52 = vsub.f32 %v346_v40, %v357_v51  ;;  %v394_v53 = vsub.f32 %v346_v40, %v392_v50 }
 0x195   : > { %v396_v55 = vpop.permute.xlu0 %395  ;;  %v367_v59 = vpop.permute.xlu1 %366 }
 0x196   : > { %v398_v62 = vadd.f32 %v396_v55, %v394_v53 }
 0x198   : > { %v783_v54 = vpop.eup %782 }
 0x199   : > { %v785_v56 = vpop.eup %784  ;;  %v1235_v57 = vmul.f32 %v783_v54, %v346_v40  ;;  %v376_v6 = vpop.permute.xlu0 %375 }
 0x19a   : > { %v1237_v58 = vmul.f32 %v785_v56, %v389_v52  ;;  %786 = vrcp.f32 %v376_v6 }
 0x19b   : > { %v354_v60 = vmul.f32 2.0, %v1235_v57  ;;  %v365_v61 = vmul.f32 %v1235_v57, %v1235_v57 }
 0x19c   : > { %v406_v63 = vmul.f32 2.0, %v1237_v58  ;;  %v413_v3 = vmul.f32 %v1237_v58, %v1237_v58 }
 0x19d   : > { %v359_v0 = vmul.f32 %v357_v51, %v354_v60  ;;  %v369_v1 = vmul.f32 %v367_v59, %v365_v61 }
 0x19e   : > { %v407_v2 = vmul.f32 %v406_v63, %v398_v62 }
 0x19f   : > { %361 = vrot.lane.b32.xlu0 %v359_v0, %s990_s30  ;;  %371 = vrot.lane.b32.xlu1 %v369_v1, %s990_s30 }
 0x1a3   : > { %409 = vrot.lane.b32.xlu0 %v407_v2, %s991_s28 }
 0x1a4   : > { %v787_v11 = vpop.eup %786 }
 0x1fe   : > { %v416_v4 = vpop.permute.xlu1 %415 }
 0x1ff   : > { %v418_v5 = vmul.f32 %v416_v4, %v413_v3 }
 0x201   : > { %420 = vrot.lane.b32.xlu1 %v418_v5, %s991_s28 }
 0x202   : > { %v425_v7 = vpop.permute.xlu1 %424 }
 0x211   : > { %v362_v8 = vpop.permute.xlu0 %361  ;;  %v372_v9 = vpop.permute.xlu1 %371 }
 0x212   : > { %v364_v10 = vsub.f32 %v346_v40, %v362_v8 }
 0x214   : > { %v374_v12 = vadd.f32 %v372_v9, %v364_v10 }
 0x215   : > { %v410_v16 = vpop.permute.xlu0 %409 }
 0x216   : > { %v379_v13 = vmul.f32 %v787_v11, %v374_v12  ;;  %v412_v17 = vsub.f32 %v398_v62, %v410_v16 }
 0x218   : > { %v380_v14 = vadd.f32 1e-05, %v379_v13 }
 0x21a   : > { %788 = vrsqrt.f32 %v380_v14 }
 0x21b   : > { %790 = vrcp.f32 %v425_v7 }
 0x224   : > { %v789_v15 = vpop.eup %788 }
 0x225   : > { %455 = vrot.lane.b32.xlu0 %v789_v15, %s986_s24  ;;  %v791_v18 = vpop.eup %790 }
 0x229   : > { %445 = vrot.lane.b32.xlu0 %v1237_v58, %s992_s0 }
 0x273   : > { %v421_v19 = vpop.permute.xlu1 %420 }
 0x274   : > { %v423_v20 = vadd.f32 %v421_v19, %v412_v17 }
 0x276   : > { %v428_v21 = vmul.f32 %v791_v18, %v423_v20 }
 0x278   : > { %v429_v22 = vadd.f32 1e-05, %v428_v21 }
 0x27a   : > { %792 = vrsqrt.f32 %v429_v22  ;;  %vm432_vm11 = vcmp.eq.f32.partialorder %v429_v22, inf  ;;  %v435_v26 = vand.u32 2147483648, %v429_v22  ;;  %vm434_vm12 = vcmp.eq.f32.partialorder %v429_v22, 0.0 }
 0x284   : > { %v793_v23 = vpop.eup %792 }
 0x285   : > { %440 = vrot.lane.b32.xlu1 %v793_v23, %s991_s28  ;;  %v431_v24 = vmul.f32 %v793_v23, %v429_v22 }
 0x287   : > { %v433_v25 = vsel %vm432_vm11, %v429_v22, %v431_v24 }
 0x288   : > { %v436_v27 = vsel %vm434_vm12, %v435_v26, %v433_v25 }
 0x297   : > { %v456_v28 = vpop.permute.xlu0 %455 }
 0x298   : > { %v458_v29 = vmul.f32 %v456_v28, %v436_v27 }
 0x29a   : > { %464 = vrot.lane.b32.xlu1 %v458_v29, %s991_s28 }
 0x29b   : > { %v446_v33 = vpop.permute.xlu0 %445 }
 0x2f7   : > { %v441_v31 = vpop.permute.xlu1 %440 }
 0x2f8   : > { %v443_v32 = vmul.f32 %v441_v31, %v438_v30 }
 0x2fa   : > { %v448_v34 = vmul.f32 %v446_v33, %v443_v32 }
 0x2fc   : > { %450 = vrot.lane.b32.xlu0 %v448_v34, %s991_s28 }
 0x300   : > { %460 = vrot.lane.b32.xlu0 %v458_v29, %s985_s6 }
 0x304   : > { %480 = vrot.lane.b32.xlu0 %v443_v32, %s988_s21 }
 0x30c   : > { %v465_v35 = vpop.permute.xlu1 %464 }
 0x30d   : > { %v467_v36 = vmul.f32 %v465_v35, %v1235_v57 }
 0x30f   : > { %469 = vrot.lane.b32.xlu1 %v467_v36, %s988_s21 }
 0x313   : > { %475 = vrot.lane.b32.xlu1 %v438_v30, %s985_s6 }
 0x36e   : > { %v451_v37 = vpop.permute.xlu0 %450 }
 0x36f   : > { %v453_v38 = vsub.f32 %v438_v30, %v451_v37 }
 0x371   : > { %485 = vrot.lane.b32.xlu1 %v453_v38, %s993_s5 }
 0x372   : > { %v461_v39 = vpop.permute.xlu0 %460 }
 0x373   : > { %v463_v40 = vmul.f32 %v461_v39, %v438_v30 }
 0x375   : > { %493 = vrot.lane.b32.xlu1 %v453_v38, %s985_s6 }
 0x376   : > { %v481_v41 = vpop.permute.xlu0 %480 }
 0x377   : > { %v483_v42 = vsub.f32 %v463_v40, %v481_v41 }
 0x379   : > { %490 = vrot.lane.b32.xlu0 %v483_v42, %s991_s28 }
 0x381   : > { %v470_v43 = vpop.permute.xlu1 %469 }
 0x382   : > { %v472_v44 = vsub.f32 %v1237_v58, %v470_v43 }
 0x384   : > { %v473_v45 = vmul.f32 %v472_v44, %v438_v30 }
 0x385   : > { %v476_v46 = vpop.permute.xlu1 %475 }
 0x386   : > { %v478_v47 = vadd.f32 %v476_v46, %v473_v45 }
 0x3e3   : > { %v486_v48 = vpop.permute.xlu1 %485 }
 0x3e4   : > { %v488_v49 = vsub.f32 %v478_v47, %v486_v48 }
 0x3e6   : > { %497 = vrot.lane.b32.xlu0 %v488_v49, %s990_s30 }
 0x3e7   : > { %v494_v52 = vpop.permute.xlu1 %493 }
 0x3eb   : > { %v491_v50 = vpop.permute.xlu0 %490 }
 0x3ec   : > { %v500_v51 = vsel %vm318_vm2, %v481_v41, %v491_v50 }
 0x3ed   : > { %v501_v53 = vsel %vm320_vm3, %v500_v51, %v494_v52 }
 0x458   : > { %v498_v54 = vpop.permute.xlu0 %497 }
 0x459   : > { %v502_v55 = vsel %vm322_vm4, %v501_v53, %v498_v54 }
 0x45a   : > { %504 = vst.msk [vmem:[%s265_s23] sm:$0xf] %vm503_vm13, %v502_v55 }
 0x45b PF: > { %s662_s29 = sshll.u32 %s968_s19, 6  ;;  %s520_s26 = sshll.u32 %s265_s23, 4  ;;  %s521_s26 = int_to_ptr.vmem [resolvable:$true] %s520_s26 }
 0x45c   : > { %s1275_s24 = scalar_lea.hbm %s1338_s3, %s662_s29  ;;  %s506_s21 = scalar_lea.sflag [#allocation5], %s263_s25 }
 0x45d   : > { %s854_s18 = scalar_lea.vmem %s521_s26, 64  ;;  %p1359_p3 = scmp.ne.s32.totalorder %s1350_s7, 0 }
 0x45e   : > { %p855_p11 = scmp.ne.s32.totalorder %s521_s26, %s854_s18  ;;  %s994_s30 = smov [#allocation8]  }
 0x45f   : > { %s858_s28 = sshll.u32 %s994_s30, 4  ;;  %s859_s28 = int_to_ptr.vmem [resolvable:$false] %s858_s28 }
 0x460   : > { %p856_p13 = pnand %p855_p11, %p1359_p3  ;;  %s860_s0 = scalar_lea.vmem %s859_s28, 128 }
 0x461   : > { %p861_p5 = scmp.lt.s32.totalorder %s521_s26, %s859_s28  ;;  %p862_p6 = scmp.lt.s32.totalorder %s860_s0, %s854_s18 }
 0x462   : > { %p857_p0 = pneg %p856_p13 }
 0x463   : > { %p863_p12 = por %p862_p6, %p861_p5 }
 0x465   : > { %p864_p2 = pnand %p863_p12, %p857_p0 }
 0x467   : > { %867 = shalt.err (!%p864_p2)
}
 0x468   : > { %s868_s19 = scalar_lea.hbm %s1275_s24, 64  ;;  %s872_s23 = scalar_lea.hbm %s1338_s3, 128 }
 0x469   : > { %p869_p8 = scmp.ne.s32.totalorder %s1275_s24, %s868_s19  ;;  %p873_p9 = scmp.lt.u32.totalorder %s1275_s24, %s1338_s3 }
 0x46a   : > { %p874_p7 = scmp.lt.u32.totalorder %s872_s23, %s868_s19  ;;  %p876_p11 = scmp.lt.u32.totalorder %s868_s19, %s1275_s24 }
 0x46b   : > { %p870_p10 = pnand %p869_p8, %p1359_p3 }
 0x46c   : > { %p875_p4 = por %p874_p7, %p873_p9 }
 0x46d   : > { %p871_p1 = pneg %p870_p10 }
 0x46e   : > { %p877_p13 = por %p876_p11, %p875_p4 }
 0x470   : > { %p878_p0 = pnand %p877_p13, %p871_p1 }
 0x472   : > { %881 = shalt.err (!%p878_p0)
}
 0x473   : > { %669 = dma.vmem_to_hbm [thread:$0]  (%p1359_p3), %s521_s26, 64, %s1275_s24, %s506_s21  }
 0x474 PF: > { %p683_p5 = scmp.ge.s32.totalorder %s980_s22, 2  ;;  %s532_s5 = sand.u32 1, %s940_s12  }
 0x475   : > { %p1360_p6 = scmp.ne.s32.totalorder %s1351_s10, 0  ;;  %s533_s29 = scalar_lea.sflag [#allocation5], %s532_s5 }
 0x477   : > { %p679_p12 = pnand %p683_p5, %p1360_p6 }
 0x479   : > { %935 = dma.done.wait (!%p679_p12), %s533_s29, 64  }
 0x47a   : > { %937 = vsyncadd (!%p679_p12), %s533_s29, 4294967232  ;;  %s22_s22 = sadd.s32 1, %s980_s22   ;;  %s1361_s19 = sld [smem:[#allocation12_spill]] }
 0x47b   : > { %p19_p2 = scmp.ge.s32.totalorder %s22_s22, 6   ;;  %s1362_s7 = sld [smem:[#allocation13_spill]] }
 0x47c   : > { %s1363_s21 = sld [smem:[#allocation14_spill]]  ;;  %s1364_s12 = smov %s944_s13 }
 0x47d   : > { %s1365_s13 = smov %s948_s14  ;;  %s1366_s14 = smov %s1102_s8 }
 0x47e   : > { %s1367_s15 = smov %s956_s16  ;;  %s1368_s16 = smov %s960_s17 }
 0x47f   : > { %s1369_s17 = smov %s1105_s9  ;;  %s1370_s18 = smov %s972_s20 }
 0x480   :  { %21 = sbr.rel (!%p19_p2) target bundleno = 13 (0xd), region = 101 }
 0x481   : > { %s1371_s20 = smov %s1362_s7 }
 0x487   :  { %538 = vsyncpa [#allocation4], 1 }
 0x488   :  { %540 = vsyncpa [#allocation4 + $0x1], 1 }
 0x489   :  { %541 = vsyncpa [#allocation7], 1 }
 0x48a   :  { %543 = vsyncpa [#allocation7 + $0x1], 1 }
 0x48b   :  { %544 = vsyncpa [#allocation5], 1 }
 0x48c   :  { %546 = vsyncpa [#allocation5 + $0x1], 1 }

</bundles_post_ra>
